<compile_context>
chip_gen: v5e
topology: v5e:2x2
jax: 0.10.0
libtpu: 0.0.40
codegen_flags: <defaults>
</compile_context>

<pallas_src>
import functools

import numpy as np
import jax
import jax.numpy as jnp
from jax import lax
from jax.experimental import pallas as pl
from jax.experimental.pallas import tpu as pltpu

GN_CHANNELS = 16          # channels per group: num_groups = Cout // 16 (as in the module)
GN_EPS = 1e-5             # nn.GroupNorm default eps


def _round_up(x, m):
    return (x + m - 1) // m * m


# ------------------------------ Pallas kernel --------------------------------

def _conv_gn_silu_kernel(x_ref, w_ref, p_ref, mask_ref, o_ref, slab_ref, *,
                         k, dil, wp, ho, wo, num_groups, act_norm):
    """Fused Conv2d(+bias) -> GroupNorm -> SiLU for one batch element.

    x_ref   : (1, Cin, L)      bf16  zero-padded image, flattened row-major
    w_ref   : (Cout, k*k*Cin)  bf16  im2col-packed conv weights
    p_ref   : (Cout, 3)        f32   [conv bias | gn weight | gn bias]
    mask_ref: (1, S_k)         f32   1.0 on valid output columns, 0.0 elsewhere
    o_ref   : (1, Cout, S_k)   f32   lane-dense output (padded-row-major space)
    slab_ref: (k*k*Cin, S_k)   bf16  VMEM scratch for the im2col slab
    """
    cin = x_ref.shape[1]
    cout = o_ref.shape[1]
    s_k = o_ref.shape[2]

    # im2col into VMEM scratch: tap (kh, kw) contributes Cin consecutive rows,
    # columns are the flattened padded-spatial index (lane-dense, S_k % 128 == 0).
    for kh in range(k):
        for kw in range(k):
            t = kh * k + kw
            start = kh * dil * wp + kw * dil
            slab_ref[t * cin:(t + 1) * cin, :] = x_ref[0, :, start:start + s_k]

    # One fused MXU matmul: (Cout, K) x (K, S_k) -> (Cout, S_k), f32 accumulation.
    y = jnp.dot(w_ref[...], slab_ref[...], preferred_element_type=jnp.float32)
    y = y + p_ref[:, 0:1]                               # conv bias

    if act_norm:
        gc = cout // num_groups                         # channels per group (16)
        inv_n = 1.0 / float(gc * ho * wo)               # valid elements per group
        m = mask_ref[...]                               # (1, S_k)
        yg = y.reshape(num_groups, gc, s_k)             # sublane-aligned split (gc % 8 == 0)

        # pass 1: masked sums -> per-group mean
        mean = jnp.sum(jnp.sum(yg * m, axis=2, keepdims=True),
                       axis=1, keepdims=True) * inv_n                  # (G,1,1)
        # pass 2: centered masked sums -> per-group variance
        d = yg - mean
        var = jnp.sum(jnp.sum(d * d * m, axis=2, keepdims=True),
                      axis=1, keepdims=True) * inv_n                   # (G,1,1)
        # pass 3: normalize + per-channel affine + SiLU
        xhat = (d * lax.rsqrt(var + GN_EPS)).reshape(cout, s_k)
        z = xhat * p_ref[:, 1:2] + p_ref[:, 2:3]
        y = z * jax.nn.sigmoid(z)                       # SiLU

    o_ref[0] = y


# --------------------------------- Wrapper ------------------------------------

def basic_conv2d_forward(x, params, *, kernel_size=3, stride=1, padding=0,
                         dilation=1, act_norm=False, upsampling=False):
    """Forward pass of BasicConv2d.  x: (B, Cin, H, W) f32, NCHW."""
    if upsampling:
        # TODO(synk): upsampling=True branch (Conv2d -> nn.PixelShuffle(2)) not implemented.
        raise NotImplementedError("upsampling=True path not implemented")
    if stride != 1:
        # TODO(synk): stride > 1 needs strided column selection; not implemented.
        raise NotImplementedError("stride != 1 not implemented")

    w = params["conv_w"]                      # (Cout, Cin, k, k) f32
    b = params["conv_b"]                      # (Cout,)
    gn_w = params["gn_w"]                     # (Cout,)
    gn_b = params["gn_b"]                     # (Cout,)

    k = kernel_size
    dil = dilation
    cout, cin = int(w.shape[0]), int(w.shape[1])
    B, _, H, W = x.shape
    ho = H + 2 * padding - dil * (k - 1)
    wo = W + 2 * padding - dil * (k - 1)
    hp, wp = H + 2 * padding, W + 2 * padding
    assert ho > 0 and wo > 0
    if act_norm:
        assert cout % GN_CHANNELS == 0, "GroupNorm requires Cout % 16 == 0"
    num_groups = max(cout // GN_CHANNELS, 1)

    # Kernel works in flattened padded-row-major column space: output pixel
    # (i, j) sits at column i*Wp + j.  S_k rounded up to 128 keeps the slab,
    # the GN/SiLU work and the output store lane-dense.
    s_k = _round_up(ho * wp, 128)
    max_start = (k - 1) * dil * wp + (k - 1) * dil
    l_in = max_start + s_k

    # Channels-first, spatial zero-pad, flatten, tail-pad, bf16 (MXU operand
    # dtype anyway; halves HBM->VMEM bytes, no NHWC transpose).
    xp = jnp.pad(x, ((0, 0), (0, 0), (padding, padding), (padding, padding)))
    xflat = xp.reshape(B, cin, hp * wp)
    xflat = jnp.pad(xflat, ((0, 0), (0, 0), (0, l_in - hp * wp)))
    xflat = xflat.astype(jnp.bfloat16)

    # im2col-packed weights: K index = (kh*k + kw)*Cin + c  (matches the slab).
    kk_cin = k * k * cin
    w_packed = jnp.transpose(w, (0, 2, 3, 1)).reshape(cout, kk_cin)
    w_packed = w_packed.astype(jnp.bfloat16)

    # merged per-channel params: [bias | gn weight | gn bias] -> (Cout, 3)
    pcol = jnp.stack([b, gn_w, gn_b], axis=1).astype(jnp.float32)

    # Static valid-column mask: column p is a real output pixel iff
    # (p % Wp) < Wo and (p // Wp) < Ho.
    col = np.arange(s_k)
    valid = ((col % wp) < wo) & ((col // wp) < ho)
    mask = jnp.asarray(valid.astype(np.float32).reshape(1, s_k))

    kern = functools.partial(_conv_gn_silu_kernel, k=k, dil=dil, wp=wp,
                             ho=ho, wo=wo, num_groups=num_groups,
                             act_norm=act_norm)

    # VMEM budget: double-buffered input & output blocks + slab + small params.
    blk_bytes = (2 * cin * l_in * 2 + 2 * cout * s_k * 4 + kk_cin * s_k * 2
                 + cout * (kk_cin * 2 + 3 * 4) + s_k * 4)
    vmem_limit = int(min(max(2 * blk_bytes, 16 * 2**20), 64 * 2**20))

    # TODO(synk): for production maps whose per-batch blocks exceed VMEM
    # (notably v7x's 64 MiB), add a spatial grid axis; GroupNorm then needs a
    # two-phase statistics pass since its reduction spans the whole image.
    out = pl.pallas_call(
        kern,
        out_shape=jax.ShapeDtypeStruct((B, cout, s_k), jnp.float32),
        grid=(B,),
        in_specs=[
            pl.BlockSpec((1, cin, l_in), lambda i: (i, 0, 0)),
            pl.BlockSpec((cout, kk_cin), lambda i: (0, 0)),
            pl.BlockSpec((cout, 3), lambda i: (0, 0)),
            pl.BlockSpec((1, s_k), lambda i: (0, 0)),
        ],
        out_specs=pl.BlockSpec((1, cout, s_k), lambda i: (i, 0, 0)),
        scratch_shapes=[pltpu.VMEM((kk_cin, s_k), jnp.bfloat16)],
        compiler_params=pltpu.CompilerParams(
            dimension_semantics=("parallel",),      # batch across TCs (v7x)
            vmem_limit_bytes=vmem_limit),
    )(xflat, w_packed, pcol, mask)

    # Drop wrap/tail columns: padded-row-major -> dense NCHW (cheap XLA slice;
    # the price for keeping every in-kernel store lane-dense).
    out = out[:, :, :ho * wp].reshape(B, cout, ho, wp)[:, :, :, :wo]
    return out


# ------------------------------ Parameters ------------------------------------

def init_params(key, in_channels, out_channels, kernel_size=3):
    """Conv: trunc_normal_(std=0.02), bias=0.  GroupNorm: weight=1, bias=0."""
    std = 0.02
    w = std * jax.random.truncated_normal(
        key, -2.0, 2.0,
        (out_channels, in_channels, kernel_size, kernel_size), dtype=jnp.float32)
    return {
        "conv_w": w,
        "conv_b": jnp.zeros((out_channels,), jnp.float32),
        "gn_w": jnp.ones((out_channels,), jnp.float32),
        "gn_b": jnp.zeros((out_channels,), jnp.float32),
    }


# ------------------------ Pure-JAX reference (check) ---------------------------

def reference_forward(x, params, *, padding, dilation, act_norm):
    y = lax.conv_general_dilated(
        x, params["conv_w"], window_strides=(1, 1),
        padding=((padding, padding), (padding, padding)),
        rhs_dilation=(dilation, dilation),
        dimension_numbers=("NCHW", "OIHW", "NCHW"))
    y = y + params["conv_b"][None, :, None, None]
    if act_norm:
        B, C, H, W = y.shape
        G = C // GN_CHANNELS
        yg = y.reshape(B, G, C // G, H, W)
        m = yg.mean(axis=(2, 3, 4), keepdims=True)
        v = yg.var(axis=(2, 3, 4), keepdims=True)
        yn = ((yg - m) / jnp.sqrt(v + GN_EPS)).reshape(B, C, H, W)
        yn = yn * params["gn_w"][None, :, None, None] \
             + params["gn_b"][None, :, None, None]
        y = yn * jax.nn.sigmoid(yn)                   # SiLU
    return y


# ----------------------------------- Main --------------------------------------

if __name__ == "__main__":
    key = jax.random.PRNGKey(0)
    kx, kp = jax.random.split(key)

    # Small shapes: Cout must be a multiple of GN_CHANNELS (=16).
    B, Cin, H, W = 2, 4, 16, 16
    Cout = 32
    x = jax.random.normal(kx, (B, Cin, H, W), dtype=jnp.float32)
    params = init_params(kp, Cin, Cout, kernel_size=3)

    fwd = jax.jit(functools.partial(basic_conv2d_forward, kernel_size=3,
                                    stride=1, padding=1, dilation=1,
                                    act_norm=True))
    out = fwd(x, params)
    jax.block_until_ready(out)
    assert out.shape == (B, Cout, H, W) and out.dtype == jnp.float32

    # Numerical check against a pure-JAX reference (loose tol: bf16 MXU operands).
    ref = reference_forward(x, params, padding=1, dilation=1, act_norm=True)
    err = float(jnp.max(jnp.abs(out - ref)))
    assert jnp.allclose(out, ref, rtol=5e-2, atol=5e-2), f"max abs err {err}"

    print("KERNEL_OK")
</pallas_src>

<mosaic_0001>
module attributes {stable_mosaic.version = 11 : i64} {
  func.func @_conv_gn_silu_kernel(%arg0: i32, %arg1: memref<1x4x422xbf16, #tpu.memory_space<vmem>>, %arg2: memref<32x36xbf16, #tpu.memory_space<vmem>>, %arg3: memref<32x3xf32, #tpu.memory_space<vmem>>, %arg4: memref<1x384xf32, #tpu.memory_space<vmem>>, %arg5: memref<1x32x384xf32, #tpu.memory_space<vmem>>, %arg6: memref<36x384xbf16, #tpu.memory_space<vmem>>) attributes {dimension_semantics = [#tpu.dimension_semantics<parallel>], iteration_bounds = array<i64: 2>, scalar_prefetch = 0 : i64, scratch_operands = 1 : i64, tpu.core_type = #tpu.core_type<tc>, window_params = [{transform_indices = @transform_0, window_bounds = array<i64: 1, 4, 422>}, {pipeline_mode = #tpu.pipeline_mode<synchronous>, transform_indices = @transform_1, window_bounds = array<i64: 32, 36>}, {pipeline_mode = #tpu.pipeline_mode<synchronous>, transform_indices = @transform_2, window_bounds = array<i64: 32, 3>}, {pipeline_mode = #tpu.pipeline_mode<synchronous>, transform_indices = @transform_3, window_bounds = array<i64: 1, 384>}, {transform_indices = @transform_4, window_bounds = array<i64: 1, 32, 384>}]} {
    %c0 = arith.constant 0 : index
    %c0_0 = arith.constant 0 : index
    %c0_1 = arith.constant 0 : index
    %0 = vector.load %arg1[%c0, %c0_0, %c0_1] : memref<1x4x422xbf16, #tpu.memory_space<vmem>>, vector<1x4x384xbf16>
    %1 = vector.shape_cast %0 : vector<1x4x384xbf16> to vector<4x384xbf16>
    %c0_2 = arith.constant 0 : index
    %c0_3 = arith.constant 0 : index
    %2 = vector.load %arg6[%c0_2, %c0_3] : memref<36x384xbf16, #tpu.memory_space<vmem>>, vector<4x384xbf16>
    tpu.vector_store %arg6[%c0_2, %c0_3], %1 {strides = array<i32>} : memref<36x384xbf16, #tpu.memory_space<vmem>>, vector<4x384xbf16>,
    %c0_4 = arith.constant 0 : index
    %c0_5 = arith.constant 0 : index
    %c1 = arith.constant 1 : index
    %3 = vector.load %arg1[%c0_4, %c0_5, %c1] : memref<1x4x422xbf16, #tpu.memory_space<vmem>>, vector<1x4x384xbf16>
    %4 = vector.shape_cast %3 : vector<1x4x384xbf16> to vector<4x384xbf16>
    %c4 = arith.constant 4 : index
    %c0_6 = arith.constant 0 : index
    %5 = vector.load %arg6[%c4, %c0_6] : memref<36x384xbf16, #tpu.memory_space<vmem>>, vector<4x384xbf16>
    tpu.vector_store %arg6[%c4, %c0_6], %4 {strides = array<i32>} : memref<36x384xbf16, #tpu.memory_space<vmem>>, vector<4x384xbf16>,
    %c0_7 = arith.constant 0 : index
    %c0_8 = arith.constant 0 : index
    %c2 = arith.constant 2 : index
    %6 = vector.load %arg1[%c0_7, %c0_8, %c2] : memref<1x4x422xbf16, #tpu.memory_space<vmem>>, vector<1x4x384xbf16>
    %7 = vector.shape_cast %6 : vector<1x4x384xbf16> to vector<4x384xbf16>
    %c8 = arith.constant 8 : index
    %c0_9 = arith.constant 0 : index
    %8 = vector.load %arg6[%c8, %c0_9] : memref<36x384xbf16, #tpu.memory_space<vmem>>, vector<4x384xbf16>
    tpu.vector_store %arg6[%c8, %c0_9], %7 {strides = array<i32>} : memref<36x384xbf16, #tpu.memory_space<vmem>>, vector<4x384xbf16>,
    %c0_10 = arith.constant 0 : index
    %c0_11 = arith.constant 0 : index
    %c18 = arith.constant 18 : index
    %9 = vector.load %arg1[%c0_10, %c0_11, %c18] : memref<1x4x422xbf16, #tpu.memory_space<vmem>>, vector<1x4x384xbf16>
    %10 = vector.shape_cast %9 : vector<1x4x384xbf16> to vector<4x384xbf16>
    %c12 = arith.constant 12 : index
    %c0_12 = arith.constant 0 : index
    %11 = vector.load %arg6[%c12, %c0_12] : memref<36x384xbf16, #tpu.memory_space<vmem>>, vector<4x384xbf16>
    tpu.vector_store %arg6[%c12, %c0_12], %10 {strides = array<i32>} : memref<36x384xbf16, #tpu.memory_space<vmem>>, vector<4x384xbf16>,
    %c0_13 = arith.constant 0 : index
    %c0_14 = arith.constant 0 : index
    %c19 = arith.constant 19 : index
    %12 = vector.load %arg1[%c0_13, %c0_14, %c19] : memref<1x4x422xbf16, #tpu.memory_space<vmem>>, vector<1x4x384xbf16>
    %13 = vector.shape_cast %12 : vector<1x4x384xbf16> to vector<4x384xbf16>
    %c16 = arith.constant 16 : index
    %c0_15 = arith.constant 0 : index
    %14 = vector.load %arg6[%c16, %c0_15] : memref<36x384xbf16, #tpu.memory_space<vmem>>, vector<4x384xbf16>
    tpu.vector_store %arg6[%c16, %c0_15], %13 {strides = array<i32>} : memref<36x384xbf16, #tpu.memory_space<vmem>>, vector<4x384xbf16>,
    %c0_16 = arith.constant 0 : index
    %c0_17 = arith.constant 0 : index
    %c20 = arith.constant 20 : index
    %15 = vector.load %arg1[%c0_16, %c0_17, %c20] : memref<1x4x422xbf16, #tpu.memory_space<vmem>>, vector<1x4x384xbf16>
    %16 = vector.shape_cast %15 : vector<1x4x384xbf16> to vector<4x384xbf16>
    %c20_18 = arith.constant 20 : index
    %c0_19 = arith.constant 0 : index
    %17 = vector.load %arg6[%c20_18, %c0_19] : memref<36x384xbf16, #tpu.memory_space<vmem>>, vector<4x384xbf16>
    tpu.vector_store %arg6[%c20_18, %c0_19], %16 {strides = array<i32>} : memref<36x384xbf16, #tpu.memory_space<vmem>>, vector<4x384xbf16>,
    %c0_20 = arith.constant 0 : index
    %c0_21 = arith.constant 0 : index
    %c36 = arith.constant 36 : index
    %18 = vector.load %arg1[%c0_20, %c0_21, %c36] : memref<1x4x422xbf16, #tpu.memory_space<vmem>>, vector<1x4x384xbf16>
    %19 = vector.shape_cast %18 : vector<1x4x384xbf16> to vector<4x384xbf16>
    %c24 = arith.constant 24 : index
    %c0_22 = arith.constant 0 : index
    %20 = vector.load %arg6[%c24, %c0_22] : memref<36x384xbf16, #tpu.memory_space<vmem>>, vector<4x384xbf16>
    tpu.vector_store %arg6[%c24, %c0_22], %19 {strides = array<i32>} : memref<36x384xbf16, #tpu.memory_space<vmem>>, vector<4x384xbf16>,
    %c0_23 = arith.constant 0 : index
    %c0_24 = arith.constant 0 : index
    %c37 = arith.constant 37 : index
    %21 = vector.load %arg1[%c0_23, %c0_24, %c37] : memref<1x4x422xbf16, #tpu.memory_space<vmem>>, vector<1x4x384xbf16>
    %22 = vector.shape_cast %21 : vector<1x4x384xbf16> to vector<4x384xbf16>
    %c28 = arith.constant 28 : index
    %c0_25 = arith.constant 0 : index
    %23 = vector.load %arg6[%c28, %c0_25] : memref<36x384xbf16, #tpu.memory_space<vmem>>, vector<4x384xbf16>
    tpu.vector_store %arg6[%c28, %c0_25], %22 {strides = array<i32>} : memref<36x384xbf16, #tpu.memory_space<vmem>>, vector<4x384xbf16>,
    %c0_26 = arith.constant 0 : index
    %c0_27 = arith.constant 0 : index
    %c38 = arith.constant 38 : index
    %24 = vector.load %arg1[%c0_26, %c0_27, %c38] : memref<1x4x422xbf16, #tpu.memory_space<vmem>>, vector<1x4x384xbf16>
    %25 = vector.shape_cast %24 : vector<1x4x384xbf16> to vector<4x384xbf16>
    %c32 = arith.constant 32 : index
    %c0_28 = arith.constant 0 : index
    %26 = vector.load %arg6[%c32, %c0_28] : memref<36x384xbf16, #tpu.memory_space<vmem>>, vector<4x384xbf16>
    tpu.vector_store %arg6[%c32, %c0_28], %25 {strides = array<i32>} : memref<36x384xbf16, #tpu.memory_space<vmem>>, vector<4x384xbf16>,
    %c0_29 = arith.constant 0 : index
    %c0_30 = arith.constant 0 : index
    %27 = vector.load %arg2[%c0_29, %c0_30] : memref<32x36xbf16, #tpu.memory_space<vmem>>, vector<32x36xbf16>
    %c0_31 = arith.constant 0 : index
    %c0_32 = arith.constant 0 : index
    %28 = vector.load %arg6[%c0_31, %c0_32] : memref<36x384xbf16, #tpu.memory_space<vmem>>, vector<36x384xbf16>
    %cst = arith.constant dense<0.000000e+00> : vector<32x384xf32>
    %29 = tpu.matmul %27, %28, %cst {dimension_numbers = #tpu.dot_dimension_numbers<[1], [0], [0], [1], [0, 0, 1, 1], [], []>} : vector<32x36xbf16>, vector<36x384xbf16>, vector<32x384xf32> -> vector<32x384xf32>
    %c0_33 = arith.constant 0 : index
    %c0_34 = arith.constant 0 : index
    %30 = vector.load %arg3[%c0_33, %c0_34] : memref<32x3xf32, #tpu.memory_space<vmem>>, vector<32x1xf32>
    %31 = vector.broadcast %30 : vector<32x1xf32> to vector<32x384xf32>
    %32 = arith.addf %29, %31 : vector<32x384xf32>
    %c0_35 = arith.constant 0 : index
    %c0_36 = arith.constant 0 : index
    %33 = vector.load %arg4[%c0_35, %c0_36] : memref<1x384xf32, #tpu.memory_space<vmem>>, vector<1x384xf32>
    %34 = vector.shape_cast %32 : vector<32x384xf32> to vector<2x16x384xf32>
    %35 = vector.shape_cast %33 : vector<1x384xf32> to vector<1x1x384xf32>
    %36 = vector.broadcast %35 : vector<1x1x384xf32> to vector<2x16x384xf32>
    %37 = arith.mulf %34, %36 : vector<2x16x384xf32>
    %cst_37 = arith.constant dense<0.000000e+00> : vector<2x16xf32>
    %38 = vector.multi_reduction <add>, %37, %cst_37 [2] : vector<2x16x384xf32> to vector<2x16xf32>
    %39 = vector.shape_cast %38 : vector<2x16xf32> to vector<2x16x1xf32>
    %cst_38 = arith.constant dense<0.000000e+00> : vector<2x1xf32>
    %40 = vector.multi_reduction <add>, %39, %cst_38 [1] : vector<2x16x1xf32> to vector<2x1xf32>
    %41 = vector.shape_cast %40 : vector<2x1xf32> to vector<2x1x1xf32>
    %cst_39 = arith.constant 2.44140625E-4 : f32
    %42 = vector.broadcast %cst_39 : f32 to vector<2x1x1xf32>
    %43 = arith.mulf %41, %42 : vector<2x1x1xf32>
    %44 = vector.broadcast %43 : vector<2x1x1xf32> to vector<2x16x384xf32>
    %45 = arith.subf %34, %44 : vector<2x16x384xf32>
    %46 = arith.mulf %45, %45 : vector<2x16x384xf32>
    %47 = vector.shape_cast %33 : vector<1x384xf32> to vector<1x1x384xf32>
    %48 = vector.broadcast %47 : vector<1x1x384xf32> to vector<2x16x384xf32>
    %49 = arith.mulf %46, %48 : vector<2x16x384xf32>
    %cst_40 = arith.constant dense<0.000000e+00> : vector<2x16xf32>
    %50 = vector.multi_reduction <add>, %49, %cst_40 [2] : vector<2x16x384xf32> to vector<2x16xf32>
    %51 = vector.shape_cast %50 : vector<2x16xf32> to vector<2x16x1xf32>
    %cst_41 = arith.constant dense<0.000000e+00> : vector<2x1xf32>
    %52 = vector.multi_reduction <add>, %51, %cst_41 [1] : vector<2x16x1xf32> to vector<2x1xf32>
    %53 = vector.shape_cast %52 : vector<2x1xf32> to vector<2x1x1xf32>
    %cst_42 = arith.constant 2.44140625E-4 : f32
    %54 = vector.broadcast %cst_42 : f32 to vector<2x1x1xf32>
    %55 = arith.mulf %53, %54 : vector<2x1x1xf32>
    %cst_43 = arith.constant 9.99999974E-6 : f32
    %56 = vector.broadcast %cst_43 : f32 to vector<2x1x1xf32>
    %57 = arith.addf %55, %56 : vector<2x1x1xf32>
    %58 = math.rsqrt %57 : vector<2x1x1xf32>
    %59 = vector.broadcast %58 : vector<2x1x1xf32> to vector<2x16x384xf32>
    %60 = arith.mulf %45, %59 : vector<2x16x384xf32>
    %61 = vector.shape_cast %60 : vector<2x16x384xf32> to vector<32x384xf32>
    %c0_44 = arith.constant 0 : index
    %c1_45 = arith.constant 1 : index
    %62 = vector.load %arg3[%c0_44, %c1_45] : memref<32x3xf32, #tpu.memory_space<vmem>>, vector<32x1xf32>
    %63 = vector.broadcast %62 : vector<32x1xf32> to vector<32x384xf32>
    %64 = arith.mulf %61, %63 : vector<32x384xf32>
    %c0_46 = arith.constant 0 : index
    %c2_47 = arith.constant 2 : index
    %65 = vector.load %arg3[%c0_46, %c2_47] : memref<32x3xf32, #tpu.memory_space<vmem>>, vector<32x1xf32>
    %66 = vector.broadcast %65 : vector<32x1xf32> to vector<32x384xf32>
    %67 = arith.addf %64, %66 : vector<32x384xf32>
    %68 = arith.negf %67 : vector<32x384xf32>
    %69 = math.exp %68 : vector<32x384xf32>
    %cst_48 = arith.constant 1.000000e+00 : f32
    %70 = vector.broadcast %cst_48 : f32 to vector<32x384xf32>
    %71 = arith.addf %70, %69 : vector<32x384xf32>
    %72 = arith.divf %70, %71 : vector<32x384xf32>
    %73 = arith.mulf %67, %72 : vector<32x384xf32>
    %c0_49 = arith.constant 0 : index
    %c0_50 = arith.constant 0 : index
    %c0_51 = arith.constant 0 : index
    %74 = vector.load %arg5[%c0_49, %c0_50, %c0_51] : memref<1x32x384xf32, #tpu.memory_space<vmem>>, vector<1x32x384xf32>
    %75 = vector.shape_cast %74 : vector<1x32x384xf32> to vector<32x384xf32>
    %76 = vector.shape_cast %73 : vector<32x384xf32> to vector<1x32x384xf32>
    tpu.vector_store %arg5[%c0_49, %c0_50, %c0_51], %76 {strides = array<i32>} : memref<1x32x384xf32, #tpu.memory_space<vmem>>, vector<1x32x384xf32>,
    return
  }
  func.func @transform_0(%arg0: i32) -> (i32, i32, i32) {
    %c0_i32 = arith.constant 0 : i32
    %c0_i32_0 = arith.constant 0 : i32
    %c0_i32_1 = arith.constant 0 : i32
    return %arg0, %c0_i32, %c0_i32_0 : i32, i32, i32
  }
  func.func @transform_1(%arg0: i32) -> (i32, i32) {
    %c0_i32 = arith.constant 0 : i32
    %c0_i32_0 = arith.constant 0 : i32
    %c0_i32_1 = arith.constant 0 : i32
    return %c0_i32, %c0_i32_0 : i32, i32
  }
  func.func @transform_2(%arg0: i32) -> (i32, i32) {
    %c0_i32 = arith.constant 0 : i32
    %c0_i32_0 = arith.constant 0 : i32
    %c0_i32_1 = arith.constant 0 : i32
    return %c0_i32, %c0_i32_0 : i32, i32
  }
  func.func @transform_3(%arg0: i32) -> (i32, i32) {
    %c0_i32 = arith.constant 0 : i32
    %c0_i32_0 = arith.constant 0 : i32
    %c0_i32_1 = arith.constant 0 : i32
    return %c0_i32, %c0_i32_0 : i32, i32
  }
  func.func @transform_4(%arg0: i32) -> (i32, i32, i32) {
    %c0_i32 = arith.constant 0 : i32
    %c0_i32_0 = arith.constant 0 : i32
    %c0_i32_1 = arith.constant 0 : i32
    return %arg0, %c0_i32, %c0_i32_0 : i32, i32, i32
  }
}

</mosaic_0001>

<bundles_post_ra>
// kernel: basic_conv2d_forward.1
= control target key start
LH: loop header
LB: loop body
LE: loop exit
PB: predicated region body
PF: predicated region fallthrough
CT: control target
= control target key end

     0   :  { %s1257_s15 = smov 0   ;;  %s1660_s0 = inlined_call_operand.vmem [shape: bf16[2,4,422], index: 0, kind: input, shape index: {}]   ;;  %s1661_s1 = inlined_call_operand.vmem [shape: bf16[32,36], index: 1, kind: input, shape index: {}]   ;;  %s1662_s2 = inlined_call_operand.vmem [shape: f32[32,3], index: 2, kind: input, shape index: {}]   ;;  %s1663_s3 = inlined_call_operand.vmem [shape: f32[1,384], index: 3, kind: input, shape index: {}]   ;;  %s1664_s4 = inlined_call_operand.vmem [shape: f32[2,32,384], index: 4, kind: output, shape index: {}]  }
   0x1 LB: > { %s1060_s16 = sadd.s32 4294967295, %s1219_s15   ;;  %p1064_p0 = scmp.ge.s32.totalorder %s1219_s15, 1  ;;  %s1219_s15 = sphi %s1257_s15, %s14_s15  }
   0x2   : > { %p162_p1 = scmp.lt.s32.totalorder %s1219_s15, 3 }
   0x4   : > { %p163_p2 = pnand %p1064_p0, %p162_p1 }
   0x5   : > { %p188_p3 = scmp.lt.s32.totalorder (!%p163_p2), %s1060_s16, 1  ;;  %s1221_s21 = smov (!%p163_p2), 127  }
   0x6   : > { %166 = sbr.rel (%p163_p2) target bundleno = 761 (0x2f9), region = 36  ;;  %s1222_s22 = smov (!%p163_p2), 126  }
   0x7   : > { %s1223_s23 = smov (!%p163_p2), 109   ;;  %s1224_s24 = smov (!%p163_p2), 108  }
   0x8   : > { %s1225_s25 = smov (!%p163_p2), 92   ;;  %s1226_s26 = smov (!%p163_p2), 91  }
   0x9   : > { %s1227_s27 = smov (!%p163_p2), 90   ;;  %s1228_s28 = smov (!%p163_p2), 110  }
   0xb   : > { %s1678_s16 = smov (!%p188_p3, %s1060_s16), 1  ;;  %vm245_vm0 = vcmask 1031168   ;;  %vm224_vm1 = vcmask 1039360   ;;  %vm331_vm2 = vcmask 752640   ;;  %vm222_vm3 = vcmask 1043456  }
   0xc   : > { %s1120_s17 = sshll.u32 %s1678_s16, 3  ;;  %vm288_vm4 = vcmask 891904   ;;  %vm310_vm5 = vcmask 883712   ;;  %vm353_vm6 = vcmask 744448   ;;  %vm374_vm7 = vcmask 736256   ;;  %s1132_s19 = smul.u32 96, %s1678_s16 }
   0xd   : > { %s192_s20 = scalar_lea.vmem %s1660_s0, %s1120_s17  ;;  %vm476_vm8 = vcmask 1041408   ;;  %vm267_vm9 = vcmask 900096   ;;  %vm469_vm10 = vcmask 293888  }
   0xe   : > { %v199_v0 = vld [vmem:[%s192_s20] sm:$0x3f] }
   0xf   : > { %201 = vst [vmem:[#allocation1] ss:$2 sm:$0xff] %v199_v0  ;;  %v208_v1 = vld [vmem:[%s192_s20] sm:$0xff] }
  0x16   : > { %v202_v2 = vld.sshfl [vmem:[#allocation1] sm:$0xff pattern:$0x75643120]  ;;  %v203_v3 = vld.sshfl [vmem:[#allocation1 + $0x8] sm:$0xff pattern:$0x75643120] }
  0x17   : > { %211 = vst [vmem:[#allocation1 + $0x1] ss:$2 sm:$0xff] %v208_v1 }
  0x18   : > { %206 = vst [vmem:[#allocation2] sm:$0x33] %v202_v2 }
  0x19   : > { %207 = vst [vmem:[#allocation2 + $0x8] sm:$0x3] %v203_v3 }
  0x1e   : > { %v214_v4 = vld.sshfl [vmem:[#allocation1 + $0x8] sm:$0xff pattern:$0x75643120]  ;;  %v212_v5 = vld.sshfl [vmem:[#allocation1] sm:$0xff pattern:$0x75643120] }
  0x1f   : > { %218 = vrot.lane.b32.xlu1 %v214_v4, %s1221_s21  ;;  %233 = vst [vmem:[#allocation1] ss:$2 sm:$0xff] %v208_v1 }
  0x26   : > { %v234_v6 = vld.sshfl [vmem:[#allocation1] sm:$0xff pattern:$0x75643120]  ;;  %v236_v7 = vld.sshfl [vmem:[#allocation1 + $0x8] sm:$0xff pattern:$0x75643120] }
  0x27   : > { %255 = vst [vmem:[#allocation1 + $0x1] ss:$2 sm:$0xff] %v208_v1  ;;  %240 = vrot.lane.b32.xlu2 %v236_v7, %s1222_s22 }
  0x2e   : > { %v256_v8 = vld.sshfl [vmem:[#allocation1] sm:$0xff pattern:$0x75643120]  ;;  %v258_v9 = vld.sshfl [vmem:[#allocation1 + $0x8] sm:$0xff pattern:$0x75643120] }
  0x2f   : > { %276 = vst [vmem:[#allocation1] ss:$2 sm:$0xff] %v208_v1 }
  0x36   : > { %v279_v10 = vld.sshfl [vmem:[#allocation1 + $0x8] sm:$0xff pattern:$0x75643120]  ;;  %v277_v11 = vld.sshfl [vmem:[#allocation1] sm:$0xff pattern:$0x75643120] }
  0x37   : > { %283 = vrot.lane.b32.xlu1 %v279_v10, %s1223_s23  ;;  %298 = vst [vmem:[#allocation1 + $0x1] ss:$2 sm:$0xff] %v208_v1  ;;  %281 = vrot.lane.b32.xlu0 %v277_v11, %s1223_s23 }
  0x3e   : > { %v301_v12 = vld.sshfl [vmem:[#allocation1 + $0x8] sm:$0xff pattern:$0x75643120]  ;;  %v299_v13 = vld.sshfl [vmem:[#allocation1] sm:$0xff pattern:$0x75643120] }
  0x3f   : > { %305 = vrot.lane.b32.xlu1 %v301_v12, %s1224_s24  ;;  %319 = vst [vmem:[#allocation1] ss:$2 sm:$0xff] %v208_v1 }
  0x46   : > { %v322_v14 = vld.sshfl [vmem:[#allocation1 + $0x8] sm:$0xff pattern:$0x75643120]  ;;  %v320_v15 = vld.sshfl [vmem:[#allocation1] sm:$0xff pattern:$0x75643120] }
  0x47   : > { %303 = vrot.lane.b32.xlu1 %v299_v13, %s1224_s24  ;;  %326 = vrot.lane.b32.xlu2 %v322_v14, %s1225_s25  ;;  %341 = vst [vmem:[#allocation1 + $0x1] ss:$2 sm:$0xff] %v208_v1  ;;  %v1292_v13 = vld [vmem:[%s1662_s2] sm:$0xff] }
  0x4e   : > { %v342_v16 = vld.sshfl [vmem:[#allocation1] sm:$0xff pattern:$0x75643120]  ;;  %v344_v17 = vld.sshfl [vmem:[#allocation1 + $0x8] sm:$0xff pattern:$0x75643120] }
  0x4f   : > { %216 = vrot.lane.b32.xlu1 %v212_v5, %s1221_s21  ;;  %346 = vrot.lane.b32.xlu0 %v342_v16, %s1226_s26  ;;  %362 = vst [vmem:[#allocation1] ss:$2 sm:$0xff] %v208_v1  ;;  %v1229_v16 = vmov 0   ;;  %s1551_s21 = scalar_lea.vmem %s1664_s4, %s1132_s19 }
  0x50   : > { %324 = vrot.lane.b32.xlu2 %v320_v15, %s1225_s25  ;;  %1152 = vset.pattern.permute.xlu1 %v1229_v16 }
  0x51   : > { %1154 = vset.pattern.permute.xlu0 %v1229_v16  ;;  %1153 = vset.pattern.permute.xlu2 %v1229_v16 }
  0x56   : > { %v365_v18 = vld.sshfl [vmem:[#allocation1 + $0x8] sm:$0xff pattern:$0x75643120]  ;;  %v363_v19 = vld.sshfl [vmem:[#allocation1] sm:$0xff pattern:$0x75643120] }
  0x57   : > { %369 = vrot.lane.b32.xlu0 %v365_v18, %s1227_s27  ;;  %401 = vperm.xlu1 %1152, %v1292_v13  }
  0x58   : > { %348 = vrot.lane.b32.xlu2 %v344_v17, %s1226_s26 }
  0x5f   : > { %367 = vrot.lane.b32.xlu0 %v363_v19, %s1227_s27 }
  0x60   : > { %238 = vrot.lane.b32.xlu2 %v234_v6, %s1222_s22 }
  0x67   : > { %262 = vrot.lane.b32.xlu0 %v258_v9, %s1228_s28 }
  0x6f   : > { %260 = vrot.lane.b32.xlu0 %v256_v8, %s1228_s28 }
  0x81   : > { %v241_v20 = vpop.permute.xlu2 %240 }
  0x82   : > { %v243_v21 = vrot.slane %v241_v20, 4 }
  0x84   : > { %v247_v22 = vsel %vm245_vm0, %v241_v20, %v243_v21 }
  0x85   : > { %251 = vst [vmem:[#allocation2 + $0x14] sm:$0x3] %v247_v22 }
  0x91   : > { %v219_v23 = vpop.permute.xlu1 %218 }
  0x92   : > { %v221_v24 = vrot.slane %v219_v23, 4 }
  0x94   : > { %v226_v25 = vsel %vm224_vm1, %v219_v23, %v221_v24 }
  0x95   : > { %230 = vst [vmem:[#allocation2 + $0x8] sm:$0xc] %v226_v25 }
  0xa1   : > { %v327_v26 = vpop.permute.xlu2 %326 }
  0xa2   : > { %v329_v27 = vrot.slane %v327_v26, 4 }
  0xa4   : > { %v333_v28 = vsel %vm331_vm2, %v327_v26, %v329_v27 }
  0xa5   : > { %337 = vst [vmem:[#allocation2 + $0x2c] sm:$0x3] %v333_v28 }
  0xa9   : > { %v284_v29 = vpop.permute.xlu1 %283  ;;  %v282_v30 = vpop.permute.xlu0 %281 }
  0xaa   : > { %v286_v31 = vrot.slane %v284_v29, 4  ;;  %v325_v32 = vpop.permute.xlu2 %324  ;;  %v285_v33 = vrot.slane %v282_v30, 4 }
  0xab   : > { %v328_v34 = vrot.slane %v325_v32, 4 }
  0xac   : > { %v290_v35 = vsel %vm288_vm4, %v284_v29, %v286_v31  ;;  %v287_v36 = vsel %vm222_vm3, %v285_v33, %v286_v31  ;;  %v1086_v29 = vld [vmem:[#allocation2 + $0x8] sm:$0xf] }
  0xad   : > { %294 = vst [vmem:[#allocation2 + $0x20] sm:$0x3] %v290_v35  ;;  %v330_v37 = vsel %vm222_vm3, %v328_v34, %v329_v27  ;;  %v289_v38 = vsel %vm288_vm4, %v282_v30, %v287_v36  ;;  %v1307_v33 = vld [vmem:[%s1662_s2 + $0x10] sm:$0xff] }
  0xae   : > { %v332_v39 = vsel %vm331_vm2, %v325_v32, %v330_v37  ;;  %293 = vst [vmem:[#allocation2 + $0x18] sm:$0x33] %v289_v38  ;;  %v1302_v32 = vld [vmem:[%s1662_s2 + $0x18] sm:$0xff]  ;;  %411 = vperm.xlu0 %1154, %v1307_v33   ;;  %v1315_v38 = vld [vmem:[%s1662_s2 + $0x8] sm:$0xff] }
  0xaf   : > { %336 = vst [vmem:[#allocation2 + $0x24] sm:$0x33] %v332_v39  ;;  %416 = vperm.xlu1 %1152, %v1302_v32   ;;  %406 = vperm.xlu2 %1153, %v1315_v38  }
  0xb1   : > { %v306_v40 = vpop.permute.xlu1 %305 }
  0xb2   : > { %v308_v41 = vrot.slane %v306_v40, 4  ;;  %v349_v42 = vpop.permute.xlu2 %348 }
  0xb3   : > { %v351_v43 = vrot.slane %v349_v42, 4 }
  0xb4   : > { %v312_v44 = vsel %vm310_vm5, %v306_v40, %v308_v41  ;;  %v1121_v40 = vld [vmem:[%s1661_s1] sm:$0xff] }
  0xb5   : > { %316 = vst [vmem:[#allocation2 + $0x20] sm:$0xc] %v312_v44  ;;  %v355_v45 = vsel %vm353_vm6, %v349_v42, %v351_v43 }
  0xb6   : > { %359 = vst [vmem:[#allocation2 + $0x2c] sm:$0xc] %v355_v45 }
  0xb9   : > { %v304_v46 = vpop.permute.xlu1 %303 }
  0xba   : > { %v307_v47 = vrot.slane %v304_v46, 4  ;;  %v239_v48 = vpop.permute.xlu2 %238 }
  0xbb   : > { %v242_v49 = vrot.slane %v239_v48, 4 }
  0xbc   : > { %v309_v50 = vsel %vm222_vm3, %v307_v47, %v308_v41  ;;  %v1098_v10 = vld [vmem:[#allocation2 + $0x20] sm:$0xf] }
  0xbd   : > { %v311_v51 = vsel %vm310_vm5, %v304_v46, %v309_v50  ;;  %v244_v52 = vsel %vm222_vm3, %v242_v49, %v243_v21  ;;  %v1128_v11 = vld [vmem:[#allocation2 + $0x28] sm:$0xf0]  ;;  %v1122_v47 = vld [vmem:[%s1661_s1 + $0x8] sm:$0xff] }
  0xbe   : > { %315 = vst [vmem:[#allocation2 + $0x18] sm:$0xcc] %v311_v51  ;;  %v246_v53 = vsel %vm245_vm0, %v239_v48, %v244_v52  ;;  %v1099_v15 = vor.u32 %v1128_v11, %v1098_v10  ;;  %v543_v48 = vld [vmem:[%s1663_s3] sm:$0x7] }
  0xbf   : > { %250 = vst [vmem:[#allocation2 + $0xc] sm:$0x33] %v246_v53  ;;  %v1333_v51 = vperm.slane %v543_v48, 0 }
  0xc1   : > { %v217_v54 = vpop.permute.xlu1 %216  ;;  %v347_v55 = vpop.permute.xlu0 %346 }
  0xc2   : > { %v220_v56 = vrot.slane %v217_v54, 4  ;;  %v350_v57 = vrot.slane %v347_v55, 4 }
  0xc4   : > { %v223_v58 = vsel %vm222_vm3, %v220_v56, %v221_v24  ;;  %v352_v59 = vsel %vm222_vm3, %v350_v57, %v351_v43 }
  0xc5   : > { %v225_v60 = vsel %vm224_vm1, %v217_v54, %v223_v58  ;;  %v354_v61 = vsel %vm353_vm6, %v347_v55, %v352_v59  ;;  %v1090_v27 = vld [vmem:[#allocation2 + $0x18] sm:$0xf]  ;;  %v1126_v36 = vld [vmem:[#allocation2 + $0x1c] sm:$0xf]  ;;  %v1337_v54 = vperm.slane %v543_v48, 1  ;;  %v1339_v55 = vperm.slane %v543_v48, 2 }
  0xc6   : > { %229 = vst [vmem:[#allocation2] sm:$0xcc] %v225_v60  ;;  %v1230_v60 = vmov 1  }
  0xc7   : > { %358 = vst [vmem:[#allocation2 + $0x24] sm:$0xcc] %v354_v61  ;;  %1155 = vset.pattern.permute.xlu1 %v1230_v60  ;;  %1156 = vset.pattern.permute.xlu2 %v1230_v60 }
  0xc8   : > { %1157 = vset.pattern.permute.xlu0 %v1230_v60 }
  0xc9   : > { %v370_v62 = vpop.permute.xlu0 %369  ;;  %v402_v50 = vpop.permute.xlu1 %401 }
  0xca   : > { %v372_v63 = vrot.slane %v370_v62, 4 }
  0xcc   : > { %v376_v0 = vsel %vm374_vm7, %v370_v62, %v372_v63 }
  0xcd   : > { %380 = vst [vmem:[#allocation2 + $0x38] sm:$0x3] %v376_v0  ;;  %v1078_v41 = vld [vmem:[#allocation2] sm:$0xf]  ;;  %v1123_v43 = vld [vmem:[#allocation2 + $0x4] sm:$0xf] }
  0xce   : > { %v1127_v26 = vld [vmem:[#allocation2 + $0x20] sm:$0xf0]  ;;  %v1092_v28 = vld [vmem:[#allocation2 + $0x24] sm:$0xf0] }
  0xcf   : > { %v1091_v35 = vor.u32 %v1127_v26, %v1090_v27  ;;  %v1095_v39 = vor.u32 %v1126_v36, %v1092_v28 }
  0xd1   : > { %v368_v1 = vpop.permute.xlu0 %367 }
  0xd2   : > { %v371_v2 = vrot.slane %v368_v1, 4 }
  0xd4   : > { %v373_v3 = vsel %vm222_vm3, %v371_v2, %v372_v63  ;;  %v394_v4 = vld [vmem:[#allocation2 + $0x38] sm:$0x3] }
  0xd5   : > { %v375_v5 = vsel %vm374_vm7, %v368_v1, %v373_v3  ;;  %v453_v6 = vunpack.c.l.b16 %v394_v4 }
  0xd6   : > { %379 = vst [vmem:[#allocation2 + $0x30] sm:$0x33] %v375_v5 }
  0xd7   : > { %v462_v7 = vpack.c.b16 %v453_v6, %v453_v6 }
  0xd9   : > { %v263_v8 = vpop.permute.xlu0 %262  ;;  %v484_v9 = vsel %vm476_vm8, %v462_v7, 0 }
  0xda   : > { %v265_v12 = vrot.slane %v263_v8, 4  ;;  %529 = vmatpush.bf16.msra.mxu2 %v484_v9 }
  0xdc   : > { %v269_v14 = vsel %vm267_vm9, %v263_v8, %v265_v12 }
  0xdd   : > { %273 = vst [vmem:[#allocation2 + $0x14] sm:$0xc] %v269_v14  ;;  %v393_v17 = vld [vmem:[#allocation2 + $0x30] sm:$0x33] }
  0xde   : > { %530 = vmatpush.bf16.msra.mxu2 %v1099_v15  ;;  %v451_v18 = vunpack.c.l.b16 %v393_v17  ;;  %v452_v19 = vunpack.c.h.b16 %v393_v17 }
  0xe0   : > { %v460_v20 = vpack.c.b16 %v451_v18, %v451_v18  ;;  %v461_v21 = vpack.c.b16 %v452_v19, %v452_v19 }
  0xe1   : > { %v261_v22 = vpop.permute.xlu0 %260 }
  0xe2   : > { %v264_v23 = vrot.slane %v261_v22, 4  ;;  %v478_v24 = vsel %vm476_vm8, %v460_v20, 0  ;;  %v481_v25 = vsel %vm476_vm8, %v461_v21, 0 }
  0xe3   : > { %491 = vmatpush.bf16.msra.mxu0 %v478_v24  ;;  %1129 = vmatpush.bf16.msra.mxu3 %v478_v24 }
  0xe4   : > { %v266_v30 = vsel %vm222_vm3, %v264_v23, %v265_v12  ;;  %510 = vmatpush.bf16.msra.mxu1 %v481_v25  ;;  %v1125_v31 = vld [vmem:[#allocation2 + $0x10] sm:$0xf0] }
  0xe5   : > { %v268_v34 = vsel %vm267_vm9, %v261_v22, %v266_v30  ;;  %v1087_v37 = vor.u32 %v1125_v31, %v1086_v29 }
  0xe6   : > { %272 = vst [vmem:[#allocation2 + $0xc] sm:$0xcc] %v268_v34 }
  0xe7   : > { %492 = vmatpush.bf16.msra.mxu0 %v1091_v35  ;;  %1130 = vmatpush.bf16.msra.mxu3 %v1091_v35 }
  0xe8   : > { %511 = vmatpush.bf16.msra.mxu1 %v1095_v39  ;;  %531 = vmatpush.bf16.msra.mxu2 %v1087_v37 }
  0xeb   : > { %1104 = vmatmul.msk.bf16.vlgmr.msra.gmra.mxu2 %vm469_vm10, %v1121_v40 }
  0xed   : > { %v1124_v42 = vld [vmem:[#allocation2 + $0x8] sm:$0xf0]  ;;  %v1080_v44 = vld [vmem:[#allocation2 + $0xc] sm:$0xf0] }
  0xee   : > { %v1079_v45 = vor.u32 %v1124_v42, %v1078_v41  ;;  %v1083_v46 = vor.u32 %v1123_v43, %v1080_v44 }
  0xf0   : > { %493 = vmatpush.bf16.msra.mxu0 %v1079_v45  ;;  %1131 = vmatpush.bf16.msra.mxu3 %v1079_v45 }
  0xf1   : > { %512 = vmatpush.bf16.msra.mxu1 %v1083_v46 }
  0xf3   : > { %1100 = vmatmul.msk.bf16.vlgmr.msra.gmra.mxu0 %vm469_vm10, %v1121_v40  ;;  %1101 = vmatmul.msk.bf16.vlgmr.msra.gmra.mxu3 %vm469_vm10, %v1122_v47 }
  0xf4   : > { %1102 = vmatmul.msk.bf16.vlgmr.msra.gmra.mxu1 %vm469_vm10, %v1121_v40 }
  0xfb   : > { %1105 = vmatmul.msk.bf16.gmra.mxu2 %vm469_vm10, %v1122_v47 }
 0x104   : > { %1103 = vmatmul.msk.bf16.gmra.mxu1 %vm469_vm10, %v1122_v47 }
 0x109   : > { %v407_v1 = vpop.permute.xlu2 %406 }
 0x120   : > { %v412_v10 = vpop.permute.xlu0 %411 }
 0x121   : > { %v417_v24 = vpop.permute.xlu1 %416 }
 0x16e   : > { %v533_v49 = vpop.f32.mrf.mxu2 }
 0x16f   : > { %v1335_v52 = vadd.f32 %v533_v49, %v402_v50 }
 0x170   : > { %v495_v53 = vpop.f32.mrf.mxu0 }
 0x171   : > { %v1341_v56 = vadd.f32 %v495_v53, %v402_v50  ;;  %v514_v57 = vpop.f32.mrf.mxu1  ;;  %v553_v62 = vmul.f32 %v1339_v55, %v1335_v52 }
 0x172   : > { %v1343_v58 = vadd.f32 %v514_v57, %v402_v50 }
 0x173   : > { %v551_v59 = vmul.f32 %v1333_v51, %v1341_v56 }
 0x174   : > { %v552_v61 = vmul.f32 %v1337_v54, %v1343_v58 }
 0x176   : > { %v535_v63 = vpop.f32.mrf.mxu2  ;;  %v563_v0 = vadd.f32 %v552_v61, %v551_v59  ;;  %v500_v9 = vpop.f32.mrf.mxu3 }
 0x177   : > { %v536_v6 = vadd.f32 %v535_v63, %v407_v1  ;;  %v1354_v15 = vadd.f32 %v500_v9, %v412_v10  ;;  %v1231_v9 = vmov 2  }
 0x178   : > { %v497_v2 = vpop.f32.mrf.mxu0  ;;  %v564_v3 = vadd.f32 %v563_v0, %v553_v62 }
 0x179   : > { %v498_v4 = vadd.f32 %v497_v2, %v407_v1  ;;  %v516_v5 = vpop.f32.mrf.mxu1  ;;  %v556_v12 = vmul.f32 %v1339_v55, %v536_v6  ;;  %v557_v21 = vmul.f32 %v1333_v51, %v1354_v15 }
 0x17a   : > { %v517_v7 = vadd.f32 %v516_v5, %v407_v1  ;;  %565 = vadd.xlane.f32.xlu2 %v564_v3 }
 0x17b   : > { %v554_v8 = vmul.f32 %v1333_v51, %v498_v4 }
 0x17c   : > { %v555_v11 = vmul.f32 %v1337_v54, %v517_v7 }
 0x17e   : > { %v538_v14 = vpop.f32.mrf.mxu2  ;;  %v567_v16 = vadd.f32 %v555_v11, %v554_v8  ;;  %v502_v25 = vpop.f32.mrf.mxu3 }
 0x17f   : > { %v1356_v17 = vadd.f32 %v538_v14, %v412_v10  ;;  %v503_v28 = vadd.f32 %v502_v25, %v417_v24 }
 0x180   : > { %v568_v18 = vadd.f32 %v567_v16, %v556_v12 }
 0x181   : > { %v519_v19 = vpop.f32.mrf.mxu1  ;;  %v559_v23 = vmul.f32 %v1339_v55, %v1356_v17  ;;  %v560_v35 = vmul.f32 %v1333_v51, %v503_v28 }
 0x182   : > { %v1358_v20 = vadd.f32 %v519_v19, %v412_v10  ;;  %569 = vadd.xlane.f32.xlu1 %v568_v18 }
 0x184   : > { %v558_v22 = vmul.f32 %v1337_v54, %v1358_v20 }
 0x186   : > { %v571_v26 = vadd.f32 %v558_v22, %v557_v21  ;;  %v540_v27 = vpop.f32.mrf.mxu2 }
 0x187   : > { %v541_v31 = vadd.f32 %v540_v27, %v417_v24 }
 0x188   : > { %v572_v29 = vadd.f32 %v571_v26, %v559_v23 }
 0x189   : > { %v521_v30 = vpop.f32.mrf.mxu1  ;;  %v562_v37 = vmul.f32 %v1339_v55, %v541_v31 }
 0x18a   : > { %v522_v34 = vadd.f32 %v521_v30, %v417_v24  ;;  %573 = vadd.xlane.f32.xlu0 %v572_v29 }
 0x18c   : > { %v561_v36 = vmul.f32 %v1337_v54, %v522_v34 }
 0x18e   : > { %v575_v39 = vadd.f32 %v561_v36, %v560_v35 }
 0x190   : > { %v576_v40 = vadd.f32 %v575_v39, %v562_v37 }
 0x192   : > { %577 = vadd.xlane.f32.xlu2 %v576_v40 }
 0x19b   : > { %698 = vperm.xlu1 %1155, %v1292_v13  }
 0x1aa   : > { %702 = vperm.xlu2 %1156, %v1315_v38  }
 0x1b2   : > { %1158 = vset.pattern.permute.xlu2 %v1231_v9 }
 0x1ed   : > { %v566_v41 = vpop.xlane.xlu2 %565 }
 0x1f5   : > { %v570_v42 = vpop.xlane.xlu1 %569 }
 0x1f6   : > { %v579_v43 = vadd.f32 %v570_v42, %v566_v41 }
 0x1f8   : > { %v580_v44 = vrot.slane %v579_v43, 4 }
 0x1fa   : > { %v581_v45 = vadd.f32 %v580_v44, %v579_v43 }
 0x1fc   : > { %v582_v46 = vrot.slane %v581_v45, 2 }
 0x1fd   : > { %v574_v53 = vpop.xlane.xlu0 %573 }
 0x1fe   : > { %v583_v47 = vadd.f32 %v582_v46, %v581_v45 }
 0x200   : > { %v584_v48 = vrot.slane %v583_v47, 1 }
 0x202   : > { %v585_v49 = vadd.f32 %v584_v48, %v583_v47 }
 0x204   : > { %v593_v50 = vmul.f32 0.00024414063, %v585_v49 }
 0x205   : > { %v578_v57 = vpop.xlane.xlu2 %577 }
 0x206   : > { %v586_v59 = vadd.f32 %v578_v57, %v574_v53  ;;  %v1371_v60 = vsub.f32 %v498_v4, %v593_v50  ;;  %v1373_v61 = vsub.f32 %v517_v7, %v593_v50  ;;  %v1375_v62 = vsub.f32 %v536_v6, %v593_v50 }
 0x207   : > { %v1378_v63 = vsub.f32 %v1341_v56, %v593_v50  ;;  %v1381_v0 = vsub.f32 %v1343_v58, %v593_v50  ;;  %v1384_v1 = vsub.f32 %v1335_v52, %v593_v50 }
 0x208   : > { %v587_v2 = vrot.slane %v586_v59, 4  ;;  %v610_v3 = vmul.f32 %v1371_v60, %v1371_v60  ;;  %v611_v4 = vmul.f32 %v1373_v61, %v1373_v61  ;;  %v612_v5 = vmul.f32 %v1375_v62, %v1375_v62 }
 0x209   : > { %v607_v56 = vmul.f32 %v1378_v63, %v1378_v63  ;;  %v608_v58 = vmul.f32 %v1381_v0, %v1381_v0  ;;  %v609_v52 = vmul.f32 %v1384_v1, %v1384_v1 }
 0x20a   : > { %v588_v6 = vadd.f32 %v587_v2, %v586_v59  ;;  %v622_v7 = vmul.f32 %v610_v3, %v1333_v51  ;;  %v623_v8 = vmul.f32 %v611_v4, %v1337_v54  ;;  %v624_v14 = vmul.f32 %v612_v5, %v1339_v55 }
 0x20b   : > { %v619_v10 = vmul.f32 %v607_v56, %v1333_v51  ;;  %v620_v11 = vmul.f32 %v608_v58, %v1337_v54  ;;  %v621_v18 = vmul.f32 %v609_v52, %v1339_v55 }
 0x20c   : > { %v589_v12 = vrot.slane %v588_v6, 2  ;;  %v635_v16 = vadd.f32 %v623_v8, %v622_v7 }
 0x20d   : > { %v631_v19 = vadd.f32 %v620_v11, %v619_v10 }
 0x20e   : > { %v590_v21 = vadd.f32 %v589_v12, %v588_v6  ;;  %v636_v22 = vadd.f32 %v635_v16, %v624_v14 }
 0x20f   : > { %v632_v23 = vadd.f32 %v631_v19, %v621_v18 }
 0x210   : > { %v591_v24 = vrot.slane %v590_v21, 1  ;;  %637 = vadd.xlane.f32.xlu1 %v636_v22 }
 0x211   : > { %633 = vadd.xlane.f32.xlu2 %v632_v23 }
 0x212   : > { %v592_v25 = vadd.f32 %v591_v24, %v590_v21 }
 0x214   : > { %v594_v26 = vmul.f32 0.00024414063, %v592_v25 }
 0x216   : > { %v1404_v27 = vsub.f32 %v503_v28, %v594_v26  ;;  %v1406_v29 = vsub.f32 %v522_v34, %v594_v26  ;;  %v1408_v30 = vsub.f32 %v541_v31, %v594_v26  ;;  %v1411_v35 = vsub.f32 %v1354_v15, %v594_v26 }
 0x217   : > { %v1414_v36 = vsub.f32 %v1358_v20, %v594_v26  ;;  %v1417_v37 = vsub.f32 %v1356_v17, %v594_v26 }
 0x218   : > { %v616_v39 = vmul.f32 %v1404_v27, %v1404_v27  ;;  %v617_v28 = vmul.f32 %v1406_v29, %v1406_v29  ;;  %v618_v34 = vmul.f32 %v1408_v30, %v1408_v30  ;;  %v613_v31 = vmul.f32 %v1411_v35, %v1411_v35 }
 0x219   : > { %v614_v15 = vmul.f32 %v1414_v36, %v1414_v36  ;;  %v615_v20 = vmul.f32 %v1417_v37, %v1417_v37 }
 0x21a   : > { %v628_v17 = vmul.f32 %v616_v39, %v1333_v51  ;;  %v629_v40 = vmul.f32 %v617_v28, %v1337_v54  ;;  %v625_v41 = vmul.f32 %v613_v31, %v1333_v51  ;;  %v630_v43 = vmul.f32 %v618_v34, %v1339_v55  ;;  %v699_v51 = vpop.permute.xlu1 %698 }
 0x21b   : > { %v626_v42 = vmul.f32 %v614_v15, %v1337_v54  ;;  %v627_v45 = vmul.f32 %v615_v20, %v1339_v55  ;;  %v703_v54 = vpop.permute.xlu2 %702 }
 0x21c   : > { %v643_v44 = vadd.f32 %v629_v40, %v628_v17 }
 0x21d   : > { %v639_v46 = vadd.f32 %v626_v42, %v625_v41 }
 0x21e   : > { %v644_v47 = vadd.f32 %v643_v44, %v630_v43 }
 0x21f   : > { %v640_v48 = vadd.f32 %v639_v46, %v627_v45 }
 0x220   : > { %645 = vadd.xlane.f32.xlu0 %v644_v47 }
 0x221   : > { %641 = vadd.xlane.f32.xlu2 %v640_v48 }
 0x229   : > { %710 = vperm.xlu1 %1155, %v1302_v32  }
 0x231   : > { %1159 = vset.pattern.permute.xlu1 %v1231_v9 }
 0x232   : > { %730 = vperm.xlu1 %1159, %v1315_v38  }
 0x234   : > { %706 = vperm.xlu0 %1157, %v1307_v33  }
 0x239   : > { %726 = vperm.xlu2 %1158, %v1292_v13  }
 0x23a   : > { %738 = vperm.xlu1 %1159, %v1302_v32  }
 0x23c   : > { %1160 = vset.pattern.permute.xlu0 %v1231_v9 }
 0x241   : > { %734 = vperm.xlu2 %1158, %v1307_v33  }
 0x283   : > { %v638_v55 = vpop.xlane.xlu1 %637 }
 0x284   : > { %v634_v49 = vpop.xlane.xlu2 %633 }
 0x285   : > { %v647_v50 = vadd.f32 %v638_v55, %v634_v49 }
 0x287   : > { %v648_v53 = vrot.slane %v647_v50, 4 }
 0x289   : > { %v649_v57 = vadd.f32 %v648_v53, %v647_v50 }
 0x28b   : > { %v650_v59 = vrot.slane %v649_v57, 2 }
 0x28d   : > { %v651_v2 = vadd.f32 %v650_v59, %v649_v57 }
 0x28f   : > { %v652_v3 = vrot.slane %v651_v2, 1 }
 0x291   : > { %v653_v38 = vadd.f32 %v652_v3, %v651_v2 }
 0x293   : > { %v661_v4 = vmul.f32 0.00024414063, %v653_v38  ;;  %v646_v5 = vpop.xlane.xlu0 %645 }
 0x294   : > { %v642_v56 = vpop.xlane.xlu2 %641 }
 0x295   : > { %v663_v13 = vadd.f32 1e-05, %v661_v4  ;;  %v654_v58 = vadd.f32 %v646_v5, %v642_v56 }
 0x297   : > { %1161 = vrsqrt.f32 %v663_v13  ;;  %v655_v32 = vrot.slane %v654_v58, 4  ;;  %vm671_vm12 = vweird.f32 %v663_v13 }
 0x299   : > { %v656_v52 = vadd.f32 %v655_v32, %v654_v58 }
 0x29b   : > { %v657_v33 = vrot.slane %v656_v52, 2  ;;  %v1443_v14 = vpop.permute.xlu1 %710 }
 0x29c   : > { %v727_v31 = vpop.permute.xlu2 %726 }
 0x29d   : > { %v1162_v6 = vpop.eup %1161  ;;  %v658_v7 = vadd.f32 %v657_v33, %v656_v52 }
 0x29e   : > { %v666_v8 = vmul.f32 %v1162_v6, %v663_v13  ;;  %vm672_vm11 = vweird.f32 %v1162_v6 }
 0x29f   : > { %v659_v9 = vrot.slane %v658_v7, 1  ;;  %vm673_vm13 = vmor %vm671_vm12, %vm672_vm11 }
 0x2a0   : > { %v667_v10 = vmul.f32 %v1162_v6, %v666_v8 }
 0x2a1   : > { %v660_v11 = vadd.f32 %v659_v9, %v658_v7 }
 0x2a2   : > { %v668_v12 = vmul.f32 0.5, %v667_v10 }
 0x2a3   : > { %v662_v16 = vmul.f32 0.00024414063, %v660_v11 }
 0x2a4   : > { %v669_v18 = vsub.f32 1.5, %v668_v12  ;;  %v731_v39 = vpop.permute.xlu1 %730 }
 0x2a5   : > { %v664_v19 = vadd.f32 1e-05, %v662_v16 }
 0x2a6   : > { %v670_v21 = vmul.f32 %v1162_v6, %v669_v18 }
 0x2a7   : > { %1163 = vrsqrt.f32 %v664_v19  ;;  %vm681_vm15 = vweird.f32 %v664_v19 }
 0x2a8   : > { %v674_v22 = vsel %vm673_vm13, %v1162_v6, %v670_v21 }
 0x2a9   : > { %v688_v23 = vmul.f32 %v674_v22, %v1371_v60  ;;  %v689_v24 = vmul.f32 %v674_v22, %v1373_v61  ;;  %v690_v25 = vmul.f32 %v674_v22, %v1375_v62  ;;  %v685_v26 = vmul.f32 %v674_v22, %v1378_v63 }
 0x2aa   : > { %v686_v28 = vmul.f32 %v674_v22, %v1381_v0  ;;  %v687_v34 = vmul.f32 %v674_v22, %v1384_v1 }
 0x2ab   : > { %v716_v15 = vmul.f32 %v703_v54, %v688_v23  ;;  %v717_v20 = vmul.f32 %v703_v54, %v689_v24  ;;  %v718_v17 = vmul.f32 %v703_v54, %v690_v25  ;;  %v713_v40 = vmul.f32 %v699_v51, %v685_v26 }
 0x2ac   : > { %v714_v41 = vmul.f32 %v699_v51, %v686_v28  ;;  %v715_v42 = vmul.f32 %v699_v51, %v687_v34 }
 0x2ad   : > { %v1164_v43 = vpop.eup %1163  ;;  %v1451_v60 = vadd.f32 %v731_v39, %v716_v15  ;;  %v1453_v61 = vadd.f32 %v731_v39, %v717_v20  ;;  %v1455_v62 = vadd.f32 %v731_v39, %v718_v17  ;;  %v1457_v63 = vadd.f32 %v727_v31, %v713_v40  ;;  %v739_v39 = vpop.permute.xlu1 %738 }
 0x2ae   : > { %v676_v44 = vmul.f32 %v1164_v43, %v664_v19  ;;  %v1459_v0 = vadd.f32 %v727_v31, %v714_v41  ;;  %v1464_v48 = vadd.f32 %v727_v31, %v715_v42  ;;  %vm682_vm14 = vweird.f32 %v1164_v43 }
 0x2af   : > { %v1109_v1 = vmul.f32 -1.442695, %v1451_v60  ;;  %v1110_v45 = vmul.f32 -1.442695, %v1453_v61  ;;  %v1111_v46 = vmul.f32 -1.442695, %v1455_v62  ;;  %vm683_vm0 = vmor %vm681_vm15, %vm682_vm14 }
 0x2b0   : > { %v677_v47 = vmul.f32 %v1164_v43, %v676_v44  ;;  %v1106_v51 = vmul.f32 -1.442695, %v1457_v63  ;;  %v1107_v55 = vmul.f32 -1.442695, %v1459_v0  ;;  %v1108_v50 = vmul.f32 -1.442695, %v1464_v48 }
 0x2b1   : > { %1165 = vpow2.f32 %v1109_v1 }
 0x2b2   : > { %v678_v54 = vmul.f32 0.5, %v677_v47  ;;  %1167 = vpow2.f32 %v1110_v45 }
 0x2b3   : > { %1169 = vpow2.f32 %v1111_v46 }
 0x2b4   : > { %v679_v49 = vsub.f32 1.5, %v678_v54  ;;  %1171 = vpow2.f32 %v1106_v51 }
 0x2b5   : > { %1173 = vpow2.f32 %v1107_v55 }
 0x2b6   : > { %v680_v53 = vmul.f32 %v1164_v43, %v679_v49  ;;  %1175 = vpow2.f32 %v1108_v50 }
 0x2b7   : > { %v1166_v57 = vpop.eup %1165 }
 0x2b8   : > { %v1168_v59 = vpop.eup %1167  ;;  %v1469_v2 = vsel %vm683_vm0, %v1164_v43, %v680_v53  ;;  %v1471_v3 = vadd.f32 1.0, %v1166_v57 }
 0x2b9   : > { %v1170_v38 = vpop.eup %1169  ;;  %v1473_v4 = vadd.f32 1.0, %v1168_v59  ;;  %v694_v13 = vmul.f32 %v1469_v2, %v1404_v27  ;;  %v695_v58 = vmul.f32 %v1469_v2, %v1406_v29  ;;  %v696_v52 = vmul.f32 %v1469_v2, %v1408_v30 }
 0x2ba   : > { %v1475_v5 = vadd.f32 1.0, %v1170_v38  ;;  %1177 = vrcp.f32 %v1471_v3  ;;  %v1172_v56 = vpop.eup %1171  ;;  %v855_v33 = vand.u32 2147483647, %v1471_v3  ;;  %v857_v6 = vand.u32 2147483648, %v1471_v3 }
 0x2bb   : > { %v1174_v32 = vpop.eup %1173  ;;  %1179 = vrcp.f32 %v1473_v4  ;;  %v872_v8 = vand.u32 2147483648, %v1473_v4  ;;  %v1489_v9 = vadd.f32 1.0, %v1172_v56  ;;  %v722_v27 = vmul.f32 %v1443_v14, %v694_v13 }
 0x2bc   : > { %1181 = vrcp.f32 %v1475_v5  ;;  %v1176_v7 = vpop.eup %1175  ;;  %v723_v29 = vmul.f32 %v1443_v14, %v695_v58  ;;  %vm851_vm1 = vweird.f32 %v1471_v3  ;;  %v870_v30 = vand.u32 2147483647, %v1473_v4 }
 0x2bd   : > { %v1495_v10 = vadd.f32 1.0, %v1174_v32  ;;  %v724_v12 = vmul.f32 %v1443_v14, %v696_v52  ;;  %v885_v16 = vand.u32 2147483647, %v1475_v5  ;;  %v887_v18 = vand.u32 2147483648, %v1475_v5 }
 0x2be   : > { %1183 = vrcp.f32 %v1489_v9  ;;  %vm1502_vm2 = vcmp.eq.f32.partialorder %v855_v33, 8.507059e+37  ;;  %v858_v22 = vor.u32 1.1754944e-38, %v857_v6  ;;  %vm866_vm3 = vweird.f32 %v1473_v4 }
 0x2bf   : > { %v1507_v23 = vadd.f32 1.0, %v1176_v7  ;;  %v873_v25 = vor.u32 1.1754944e-38, %v872_v8  ;;  %vm881_vm4 = vweird.f32 %v1475_v5  ;;  %v812_v14 = vand.u32 2147483648, %v1489_v9 }
 0x2c0   : > { %v1178_v11 = vpop.eup %1177  ;;  %1185 = vrcp.f32 %v1495_v10  ;;  %v827_v26 = vand.u32 2147483648, %v1495_v10  ;;  %vm1514_vm5 = vcmp.eq.f32.partialorder %v870_v30, 8.507059e+37  ;;  %v810_v20 = vand.u32 2147483647, %v1489_v9 }
 0x2c1   : > { %v847_v19 = vmul.f32 %v1178_v11, %v1471_v3  ;;  %v1180_v24 = vpop.eup %1179  ;;  %v1519_v17 = vadd.f32 %v739_v39, %v722_v27  ;;  %vm852_vm6 = vweird.f32 %v1178_v11  ;;  %vm1522_vm7 = vcmp.eq.f32.partialorder %v885_v16, 8.507059e+37 }
 0x2c2   : > { %v1182_v28 = vpop.eup %1181  ;;  %v862_v31 = vmul.f32 %v1180_v24, %v1473_v4  ;;  %v888_v42 = vor.u32 1.1754944e-38, %v887_v18  ;;  %v825_v43 = vand.u32 2147483647, %v1495_v10  ;;  %vm867_vm8 = vweird.f32 %v1180_v24  ;;  %vm853_vm13 = vmor %vm851_vm1, %vm852_vm6 }
 0x2c3   : > { %v848_v34 = vsub.f32 1.0, %v847_v19  ;;  %v877_v40 = vmul.f32 %v1182_v28, %v1475_v5  ;;  %vm806_vm9 = vweird.f32 %v1489_v9  ;;  %1187 = vrcp.f32 %v1507_v23  ;;  %vm868_vm0 = vmor %vm866_vm3, %vm867_vm8 }
 0x2c4   : > { %v863_v1 = vsub.f32 1.0, %v862_v31  ;;  %v1184_v45 = vpop.eup %1183  ;;  %vm882_vm10 = vweird.f32 %v1182_v28  ;;  %v813_v47 = vor.u32 1.1754944e-38, %v812_v14  ;;  %v828_v51 = vor.u32 1.1754944e-38, %v827_v26 }
 0x2c5   : > { %v849_v44 = vmul.f32 %v1178_v11, %v848_v34  ;;  %v878_v46 = vsub.f32 1.0, %v877_v40  ;;  %v802_v49 = vmul.f32 %v1184_v45, %v1489_v9  ;;  %vm1531_vm11 = vcmp.eq.f32.partialorder %v810_v20, 8.507059e+37 }
 0x2c6   : > { %v864_v55 = vmul.f32 %v1180_v24, %v863_v1  ;;  %vm821_vm12 = vweird.f32 %v1495_v10  ;;  %v840_v53 = vand.u32 2147483647, %v1507_v23  ;;  %v1186_v57 = vpop.eup %1185  ;;  %vm807_vm14 = vweird.f32 %v1184_v45 }
 0x2c7   : > { %v850_v54 = vadd.f32 %v1178_v11, %v849_v44  ;;  %v879_v59 = vmul.f32 %v1182_v28, %v878_v46  ;;  %v842_v38 = vand.u32 2147483648, %v1507_v23  ;;  %v1541_v56 = vadd.f32 %v739_v39, %v723_v29  ;;  %vm808_vm3 = vmor %vm806_vm9, %vm807_vm14 }
 0x2c8   : > { %v865_v58 = vadd.f32 %v1180_v24, %v864_v55  ;;  %v803_v32 = vsub.f32 1.0, %v802_v49  ;;  %v817_v52 = vmul.f32 %v1186_v57, %v1495_v10  ;;  %vm1544_vm15 = vcmp.eq.f32.partialorder %v825_v43, 8.507059e+37 }
 0x2c9   : > { %v854_v13 = vsel %vm853_vm13, %v1178_v11, %v850_v54  ;;  %v880_v6 = vadd.f32 %v1182_v28, %v879_v59  ;;  %vm822_vm1 = vweird.f32 %v1186_v57  ;;  %vm836_vm6 = vweird.f32 %v1507_v23  ;;  %v1188_v8 = vpop.eup %1187  ;;  %vm883_vm13 = vmor %vm881_vm4, %vm882_vm10 }
 0x2ca   : > { %v859_v3 = vsel %vm1502_vm2, %v858_v22, %v854_v13  ;;  %v1559_v7 = vadd.f32 %v739_v39, %v724_v12  ;;  %v869_v27 = vsel %vm868_vm0, %v1180_v24, %v865_v58  ;;  %v804_v30 = vmul.f32 %v1184_v45, %v803_v32  ;;  %vm823_vm4 = vmor %vm821_vm12, %vm822_vm1 }
 0x2cb   : > { %v984_v29 = vmul.f32 %v859_v3, %v1451_v60  ;;  %v818_v11 = vsub.f32 1.0, %v817_v52  ;;  %v874_v4 = vsel %vm1514_vm5, %v873_v25, %v869_v27  ;;  %v884_v16 = vsel %vm883_vm13, %v1182_v28, %v880_v6 }
 0x2cc   : > { %v832_v18 = vmul.f32 %v1188_v8, %v1507_v23  ;;  %vm837_vm2 = vweird.f32 %v1188_v8  ;;  %v889_v12 = vsel %vm1522_vm7, %v888_v42, %v884_v16  ;;  %v985_v19 = vmul.f32 %v874_v4, %v1453_v61  ;;  %v707_v61 = vpop.permute.xlu0 %706 }
 0x2cd   : > { %996 = vst [vmem:[%s1551_s21 + $0x18] sm:$0xff] %v984_v29  ;;  %v805_v5 = vadd.f32 %v1184_v45, %v804_v30  ;;  %v819_v21 = vmul.f32 %v1186_v57, %v818_v11  ;;  %v986_v60 = vmul.f32 %v889_v12, %v1455_v62  ;;  %v1115_v24 = vmul.f32 -1.442695, %v1519_v17  ;;  %vm838_vm5 = vmor %vm836_vm6, %vm837_vm2 }
 0x2ce   : > { %v833_v22 = vsub.f32 1.0, %v832_v18  ;;  %v1116_v25 = vmul.f32 -1.442695, %v1541_v56  ;;  %997 = vst [vmem:[%s1551_s21 + $0x20] sm:$0xff] %v985_v19  ;;  %v1117_v39 = vmul.f32 -1.442695, %v1559_v7  ;;  %v691_v28 = vmul.f32 %v1469_v2, %v1411_v35 }
 0x2cf   : > { %v809_v14 = vsel %vm808_vm3, %v1184_v45, %v805_v5  ;;  %v820_v26 = vadd.f32 %v1186_v57, %v819_v21  ;;  %998 = vst [vmem:[%s1551_s21 + $0x28] sm:$0xff] %v986_v60  ;;  %1189 = vpow2.f32 %v1115_v24  ;;  %v692_v34 = vmul.f32 %v1469_v2, %v1414_v36 }
 0x2d0   : > { %v814_v62 = vsel %vm1531_vm11, %v813_v47, %v809_v14  ;;  %v834_v9 = vmul.f32 %v1188_v8, %v833_v22  ;;  %1191 = vpow2.f32 %v1116_v25  ;;  %v693_v35 = vmul.f32 %v1469_v2, %v1417_v37 }
 0x2d1   : > { %v824_v31 = vsel %vm823_vm4, %v1186_v57, %v820_v26  ;;  %v981_v15 = vmul.f32 %v814_v62, %v1457_v63  ;;  %1193 = vpow2.f32 %v1117_v39  ;;  %v719_v10 = vmul.f32 %v707_v61, %v691_v28  ;;  %v735_v63 = vpop.permute.xlu2 %734 }
 0x2d2   : > { %v829_v20 = vsel %vm1544_vm15, %v828_v51, %v824_v31  ;;  %v835_v40 = vadd.f32 %v1188_v8, %v834_v9  ;;  %v843_v41 = vor.u32 1.1754944e-38, %v842_v38  ;;  %v720_v42 = vmul.f32 %v707_v61, %v692_v34 }
 0x2d3   : > { %v982_v36 = vmul.f32 %v829_v20, %v1459_v0  ;;  %993 = vst [vmem:[%s1551_s21] sm:$0xff] %v981_v15  ;;  %v721_v43 = vmul.f32 %v707_v61, %v693_v35  ;;  %vm841_vm7 = vcmp.eq.f32.partialorder %v840_v53, 8.507059e+37  ;;  %v1602_v2 = vadd.f32 %v735_v63, %v719_v10 }
 0x2d4   : > { %v839_v37 = vsel %vm838_vm5, %v1188_v8, %v835_v40  ;;  %v1605_v1 = vadd.f32 %v735_v63, %v720_v42 }
 0x2d5   : > { %v844_v44 = vsel %vm841_vm7, %v843_v41, %v839_v37  ;;  %994 = vst [vmem:[%s1551_s21 + $0x8] sm:$0xff] %v982_v36  ;;  %v1190_v45 = vpop.eup %1189  ;;  %v1608_v47 = vadd.f32 %v735_v63, %v721_v43  ;;  %v1112_v0 = vmul.f32 -1.442695, %v1602_v2 }
 0x2d6   : > { %v983_v46 = vmul.f32 %v844_v44, %v1464_v48  ;;  %v1192_v51 = vpop.eup %1191  ;;  %v798_v54 = vadd.f32 1.0, %v1190_v45  ;;  %v1113_v50 = vmul.f32 -1.442695, %v1605_v1 }
 0x2d7   : > { %v1194_v55 = vpop.eup %1193  ;;  %v799_v49 = vadd.f32 1.0, %v1192_v51  ;;  %1195 = vpow2.f32 %v1112_v0  ;;  %v1114_v53 = vmul.f32 -1.442695, %v1608_v47 }
 0x2d8   : > { %995 = vst [vmem:[%s1551_s21 + $0x10] sm:$0xff] %v983_v46  ;;  %v800_v23 = vadd.f32 1.0, %v1194_v55  ;;  %1197 = vrcp.f32 %v798_v54  ;;  %v945_v57 = vand.u32 2147483647, %v798_v54  ;;  %vm941_vm8 = vweird.f32 %v798_v54 }
 0x2d9   : > { %1199 = vrcp.f32 %v799_v49  ;;  %v947_v52 = vand.u32 2147483648, %v798_v54  ;;  %vm956_vm9 = vweird.f32 %v799_v49  ;;  %v960_v8 = vand.u32 2147483647, %v799_v49 }
 0x2da   : > { %1201 = vrcp.f32 %v800_v23  ;;  %vm1617_vm10 = vcmp.eq.f32.partialorder %v945_v57, 8.507059e+37  ;;  %v962_v11 = vand.u32 2147483648, %v799_v49  ;;  %vm971_vm11 = vweird.f32 %v800_v23 }
 0x2db   : > { %1203 = vpow2.f32 %v1113_v50  ;;  %v975_v4 = vand.u32 2147483647, %v800_v23  ;;  %v977_v21 = vand.u32 2147483648, %v800_v23  ;;  %v948_v14 = vor.u32 1.1754944e-38, %v947_v52 }
 0x2dc   : > { %1205 = vpow2.f32 %v1114_v53  ;;  %vm961_vm1 = vcmp.eq.f32.partialorder %v960_v8, 8.507059e+37  ;;  %v963_v61 = vor.u32 1.1754944e-38, %v962_v11 }
 0x2dd   : > { %v1196_v48 = vpop.eup %1195  ;;  %vm976_vm2 = vcmp.eq.f32.partialorder %v975_v4, 8.507059e+37  ;;  %v978_v31 = vor.u32 1.1754944e-38, %v977_v21 }
 0x2de   : > { %v1198_v59 = vpop.eup %1197  ;;  %v1614_v38 = vadd.f32 1.0, %v1196_v48 }
 0x2df   : > { %v1200_v13 = vpop.eup %1199  ;;  %v937_v58 = vmul.f32 %v1198_v59, %v798_v54  ;;  %vm942_vm12 = vweird.f32 %v1198_v59 }
 0x2e0   : > { %v1202_v32 = vpop.eup %1201  ;;  %v952_v33 = vmul.f32 %v1200_v13, %v799_v49  ;;  %1207 = vrcp.f32 %v1614_v38  ;;  %vm957_vm14 = vweird.f32 %v1200_v13  ;;  %vm943_vm0 = vmor %vm941_vm8, %vm942_vm12  ;;  %v900_v36 = vand.u32 2147483647, %v1614_v38 }
 0x2e1   : > { %v938_v3 = vsub.f32 1.0, %v937_v58  ;;  %v967_v27 = vmul.f32 %v1202_v32, %v800_v23  ;;  %v1204_v29 = vpop.eup %1203  ;;  %vm972_vm15 = vweird.f32 %v1202_v32  ;;  %vm958_vm6 = vmor %vm956_vm9, %vm957_vm14  ;;  %v902_v63 = vand.u32 2147483648, %v1614_v38 }
 0x2e2   : > { %v953_v30 = vsub.f32 1.0, %v952_v33  ;;  %v1206_v16 = vpop.eup %1205  ;;  %v1621_v19 = vadd.f32 1.0, %v1204_v29  ;;  %vm973_vm13 = vmor %vm971_vm11, %vm972_vm15  ;;  %vm896_vm4 = vweird.f32 %v1614_v38  ;;  %vm901_vm7 = vcmp.eq.f32.partialorder %v900_v36, 8.507059e+37 }
 0x2e3   : > { %v939_v18 = vmul.f32 %v1198_v59, %v938_v3  ;;  %v968_v12 = vsub.f32 1.0, %v967_v27  ;;  %v1623_v60 = vadd.f32 1.0, %v1206_v16  ;;  %v903_v46 = vor.u32 1.1754944e-38, %v902_v63 }
 0x2e4   : > { %v954_v5 = vmul.f32 %v1200_v13, %v953_v30  ;;  %1209 = vrcp.f32 %v1621_v19  ;;  %v917_v54 = vand.u32 2147483648, %v1621_v19 }
 0x2e5   : > { %v940_v22 = vadd.f32 %v1198_v59, %v939_v18  ;;  %v969_v24 = vmul.f32 %v1202_v32, %v968_v12  ;;  %1211 = vrcp.f32 %v1623_v60  ;;  %v932_v50 = vand.u32 2147483648, %v1623_v60 }
 0x2e6   : > { %v1208_v25 = vpop.eup %1207  ;;  %v955_v26 = vadd.f32 %v1200_v13, %v954_v5  ;;  %v930_v48 = vand.u32 2147483647, %v1623_v60  ;;  %vm926_vm12 = vweird.f32 %v1623_v60 }
 0x2e7   : > { %v944_v39 = vsel %vm943_vm0, %v1198_v59, %v940_v22  ;;  %v970_v28 = vadd.f32 %v1202_v32, %v969_v24  ;;  %v892_v62 = vmul.f32 %v1208_v25, %v1614_v38  ;;  %vm897_vm3 = vweird.f32 %v1208_v25 }
 0x2e8   : > { %v949_v9 = vsel %vm1617_vm10, %v948_v14, %v944_v39  ;;  %v959_v34 = vsel %vm958_vm6, %v1200_v13, %v955_v26  ;;  %vm898_vm5 = vmor %vm896_vm4, %vm897_vm3  ;;  %vm911_vm10 = vweird.f32 %v1621_v19  ;;  %v918_v38 = vor.u32 1.1754944e-38, %v917_v54 }
 0x2e9   : > { %v964_v15 = vsel %vm961_vm1, %v963_v61, %v959_v34  ;;  %v974_v35 = vsel %vm973_vm13, %v1202_v32, %v970_v28  ;;  %v990_v20 = vmul.f32 %v949_v9, %v1519_v17  ;;  %v893_v40 = vsub.f32 1.0, %v892_v62 }
 0x2ea   : > { %v979_v10 = vsel %vm976_vm2, %v978_v31, %v974_v35  ;;  %v991_v41 = vmul.f32 %v964_v15, %v1541_v56  ;;  %v1210_v42 = vpop.eup %1209  ;;  %v933_v32 = vor.u32 1.1754944e-38, %v932_v50  ;;  %vm931_vm0 = vcmp.eq.f32.partialorder %v930_v48, 8.507059e+37 }
 0x2eb   : > { %v992_v43 = vmul.f32 %v979_v10, %v1559_v7  ;;  %1002 = vst [vmem:[%s1551_s21 + $0x48] sm:$0xff] %v990_v20  ;;  %v894_v37 = vmul.f32 %v1208_v25, %v893_v40  ;;  %v1212_v44 = vpop.eup %1211  ;;  %v907_v45 = vmul.f32 %v1210_v42, %v1621_v19  ;;  %v915_v7 = vand.u32 2147483647, %v1621_v19 }
 0x2ec   : > { %1003 = vst [vmem:[%s1551_s21 + $0x50] sm:$0xff] %v991_v41  ;;  %v922_v56 = vmul.f32 %v1212_v44, %v1623_v60  ;;  %vm912_vm8 = vweird.f32 %v1210_v42  ;;  %vm927_vm9 = vweird.f32 %v1212_v44 }
 0x2ed   : > { %1004 = vst [vmem:[%s1551_s21 + $0x58] sm:$0xff] %v992_v43  ;;  %v895_v17 = vadd.f32 %v1208_v25, %v894_v37  ;;  %v908_v0 = vsub.f32 1.0, %v907_v45  ;;  %vm913_vm11 = vmor %vm911_vm10, %vm912_vm8  ;;  %vm916_vm14 = vcmp.eq.f32.partialorder %v915_v7, 8.507059e+37 }
 0x2ee   : > { %v923_v55 = vsub.f32 1.0, %v922_v56  ;;  %vm928_vm15 = vmor %vm926_vm12, %vm927_vm9 }
 0x2ef   : > { %v899_v51 = vsel %vm898_vm5, %v1208_v25, %v895_v17  ;;  %v909_v23 = vmul.f32 %v1210_v42, %v908_v0 }
 0x2f0   : > { %v904_v49 = vsel %vm901_vm7, %v903_v46, %v899_v51  ;;  %v924_v53 = vmul.f32 %v1212_v44, %v923_v55 }
 0x2f1   : > { %v987_v57 = vmul.f32 %v904_v49, %v1602_v2  ;;  %v910_v59 = vadd.f32 %v1210_v42, %v909_v23 }
 0x2f2   : > { %v925_v13 = vadd.f32 %v1212_v44, %v924_v53 }
 0x2f3   : > { %999 = vst [vmem:[%s1551_s21 + $0x30] sm:$0xff] %v987_v57  ;;  %v914_v58 = vsel %vm913_vm11, %v1210_v42, %v910_v59 }
 0x2f4   : > { %v919_v52 = vsel %vm916_vm14, %v918_v38, %v914_v58  ;;  %v929_v33 = vsel %vm928_vm15, %v1212_v44, %v925_v13 }
 0x2f5   : > { %v934_v3 = vsel %vm931_vm0, %v933_v32, %v929_v33  ;;  %v988_v2 = vmul.f32 %v919_v52, %v1605_v1 }
 0x2f6   : > { %v989_v6 = vmul.f32 %v934_v3, %v1608_v47 }
 0x2f7   : > { %1000 = vst [vmem:[%s1551_s21 + $0x38] sm:$0xff] %v988_v2 }
 0x2f8   : > { %1001 = vst [vmem:[%s1551_s21 + $0x40] sm:$0xff] %v989_v6 }
 0x2f9 PF: > { %s14_s15 = sadd.s32 1, %s1219_s15  }
 0x2fa   : > { %p11_p4 = scmp.ge.s32.totalorder %s14_s15, 4  }
 0x2fc   :  { %13 = sbr.rel (!%p11_p4) target bundleno = 1 (0x1), region = 70 }

</bundles_post_ra>
